<compile_context>
chip_gen: v5e
topology: v5e:2x2
jax: 0.10.0
libtpu: 0.0.40
codegen_flags: <defaults>
</compile_context>

<pallas_src>
import math

import jax
import jax.numpy as jnp
from jax.experimental import pallas as pl
from jax.experimental.pallas import tpu as pltpu


def _round_up(x, m):
    return (x + m - 1) // m * m


def _vmem_capacity_bytes():
    try:
        return int(pltpu.get_tpu_info().vmem_capacity_bytes)
    except Exception:
        return 64 * 1024 * 1024          # conservative (v7x per-TC VMEM)


def _default_tiles():
    cap = _vmem_capacity_bytes()
    if cap >= 100 * 1024 * 1024:         # v5e / v6e: 128 MiB VMEM
        return 512, 2048
    return 256, 2048                     # v7x: 64 MiB VMEM per TC


# --------------------------------------------------------------------------- #
# Kernel 1: tiny fused MLP   tanh(fc3(tanh(fc2(tanh(fc1(x))))))  -> h3 (bf16) #
# --------------------------------------------------------------------------- #
def neural_lm2_mlp_kernel(x_ref, w1_ref, b1_ref, w2_ref, b2_ref,
                          w3_ref, b3_ref, h3_ref):
    cdt = w1_ref.dtype                                   # compute dtype (bf16)
    x = x_ref[...]                                       # (TB, Dp), already bf16
    h1 = jnp.tanh(jnp.dot(x, w1_ref[...],
                          preferred_element_type=jnp.float32) + b1_ref[...])
    # dropout (eval mode) == identity
    h2 = jnp.tanh(jnp.dot(h1.astype(cdt), w2_ref[...],
                          preferred_element_type=jnp.float32) + b2_ref[...])
    # dropout (eval mode) == identity
    h3 = jnp.tanh(jnp.dot(h2.astype(cdt), w3_ref[...],
                          preferred_element_type=jnp.float32) + b3_ref[...])
    h3_ref[...] = h3.astype(h3_ref.dtype)


# --------------------------------------------------------------------------- #
# Kernel 2: tiled output matmul   logits_tile = h3_tile @ Wo_tile + bo_tile    #
# --------------------------------------------------------------------------- #
def neural_lm2_out_kernel(h3_ref, wo_ref, bo_ref, o_ref):
    acc = jnp.dot(h3_ref[...], wo_ref[...], preferred_element_type=jnp.float32)
    o_ref[...] = (acc + bo_ref[...]).astype(o_ref.dtype)


# --------------------------------------------------------------------------- #
# One-time parameter preparation (pad to 128-aligned shapes, cast to bf16).    #
# --------------------------------------------------------------------------- #
def prepare_params(params, *, compute_dtype=jnp.bfloat16, block_v=None):
    """Pad + cast weights once (outside the per-forward hot path)."""
    if block_v is None:
        _, block_v = _default_tiles()

    w1, b1 = params["w1"], params["b1"]
    w2, b2 = params["w2"], params["b2"]
    w3, b3 = params["w3"], params["b3"]
    wo, bo = params["wo"], params["bo"]

    d_in, H = w1.shape
    H2, H3, V = w2.shape[1], w3.shape[1], wo.shape[1]
    Dp, Hp, H2p, H3p = (_round_up(v, 128) for v in (d_in, H, H2, H3))
    TV = min(block_v, _round_up(V, 128))
    Vp = _round_up(V, TV)                # vocab padded to a multiple of the tile

    def pad2(a, rows, cols, dtype):
        return jnp.pad(a.astype(dtype),
                       ((0, rows - a.shape[0]), (0, cols - a.shape[1])))

    # Zero padding keeps the math exact: padded hidden units get bias 0 ->
    # tanh(0) = 0, and padded weight rows are 0, so they contribute nothing.
    return {
        "embeds": params["embeds"].astype(compute_dtype),
        "w1": pad2(w1, Dp, Hp, compute_dtype),  "b1": pad2(b1, 1, Hp, jnp.float32),
        "w2": pad2(w2, Hp, H2p, compute_dtype), "b2": pad2(b2, 1, H2p, jnp.float32),
        "w3": pad2(w3, H2p, H3p, compute_dtype), "b3": pad2(b3, 1, H3p, jnp.float32),
        "wo": pad2(wo, H3p, Vp, compute_dtype),  "bo": pad2(bo, 1, Vp, jnp.float32),
    }


# --------------------------------------------------------------------------- #
# Forward                                                                      #
# --------------------------------------------------------------------------- #
def neural_lm2_forward(tokens, prepped, *, vocab_size, block_b=None,
                       block_v=None, out_dtype=jnp.bfloat16):
    """tokens: int32 (B, context_size). Returns logits (B, vocab_size) in out_dtype."""
    if block_b is None or block_v is None:
        db, dv = _default_tiles()
        block_b = db if block_b is None else block_b
        block_v = dv if block_v is None else block_v

    emb = prepped["embeds"]                              # (vocab, E), bf16
    w1p, b1p = prepped["w1"], prepped["b1"]
    w2p, b2p = prepped["w2"], prepped["b2"]
    w3p, b3p = prepped["w3"], prepped["b3"]
    wop, bop = prepped["wo"], prepped["bo"]

    B, C = tokens.shape
    E = emb.shape[1]
    d_in = C * E
    Dp, Hp = w1p.shape
    H2p = w2p.shape[1]
    H3p, Vp = wop.shape
    V = vocab_size
    cdt = w1p.dtype

    # Tiles: batch tile multiple of 16 sublanes (bf16 packing), vocab tile of 128 lanes.
    TB = min(block_b, _round_up(B, 16))
    Bp = _round_up(B, TB)
    TV = min(block_v, Vp)
    if Vp % TV:                                          # mismatched prepare/forward cfg
        TV = 128 * math.gcd(Vp // 128, TV // 128)

    # Embedding lookup + flatten + pad (plain-JAX glue; small).
    x_flat = jnp.take(emb, tokens, axis=0).reshape(B, d_in)
    xp = jnp.pad(x_flat, ((0, Bp - B), (0, Dp - d_in)))  # (Bp, Dp) bf16

    # ---- Kernel 1: h3 = tanh(fc3(tanh(fc2(tanh(fc1(x)))))), tiled over batch ----
    const1 = lambda bi: (0, 0)
    h3 = pl.pallas_call(
        neural_lm2_mlp_kernel,
        out_shape=jax.ShapeDtypeStruct((Bp, H3p), cdt),
        grid_spec=pltpu.PrefetchScalarGridSpec(
            num_scalar_prefetch=0,
            grid=(Bp // TB,),
            in_specs=[
                pl.BlockSpec((TB, Dp), lambda bi: (bi, 0)),   # x tile
                pl.BlockSpec((Dp, Hp), const1),               # w1 (resident)
                pl.BlockSpec((1, Hp), const1),                # b1
                pl.BlockSpec((Hp, H2p), const1),              # w2 (resident)
                pl.BlockSpec((1, H2p), const1),               # b2
                pl.BlockSpec((H2p, H3p), const1),             # w3 (resident)
                pl.BlockSpec((1, H3p), const1),               # b3
            ],
            out_specs=pl.BlockSpec((TB, H3p), lambda bi: (bi, 0)),
        ),
        compiler_params=pltpu.CompilerParams(
            dimension_semantics=("parallel",)),
    )(xp, w1p, b1p, w2p, b2p, w3p, b3p)

    # ---- Kernel 2: logits = h3 @ Wo + bo, tiled (vocab outer, batch inner) ----
    out_itemsize = jnp.dtype(out_dtype).itemsize
    needed = 2 * (TB * H3p * 2 + H3p * TV * 2 + TV * 4 + TB * TV * out_itemsize)
    cap = _vmem_capacity_bytes()
    vmem_limit = int(min(cap * 3 // 4, max(4 * needed, 32 * 1024 * 1024)))

    logits_padded = pl.pallas_call(
        neural_lm2_out_kernel,
        out_shape=jax.ShapeDtypeStruct((Bp, Vp), out_dtype),
        grid_spec=pltpu.PrefetchScalarGridSpec(
            num_scalar_prefetch=0,
            grid=(Vp // TV, Bp // TB),   # vocab outer -> Wo tile reused across batch
            in_specs=[
                pl.BlockSpec((TB, H3p), lambda vi, bi: (bi, 0)),   # h3 tile
                pl.BlockSpec((H3p, TV), lambda vi, bi: (0, vi)),   # Wo (streamed)
                pl.BlockSpec((1, TV), lambda vi, bi: (0, vi)),     # bo
            ],
            out_specs=pl.BlockSpec((TB, TV), lambda vi, bi: (bi, vi)),
        ),
        compiler_params=pltpu.CompilerParams(
            dimension_semantics=("parallel", "parallel"),
            vmem_limit_bytes=vmem_limit,
        ),
    )(h3, wop, bop)

    if Bp == B and Vp == V:              # skip the un-pad slice when not needed
        return logits_padded
    return logits_padded[:B, :V]


# --------------------------------------------------------------------------- #
# Synthetic parameters + pure-JAX reference                                    #
# --------------------------------------------------------------------------- #
def init_params(key, vocab_size, embed_dim, context_size, hidden_dim):
    """Deterministic synthetic parameters (shapes match NeuralLM2.__init__)."""
    ks = jax.random.split(key, 9)
    d_in = context_size * embed_dim
    h2, h3 = hidden_dim // 2, hidden_dim // 4

    def lin(kw, kb, fan_in, fan_out):
        # Weights stored (in, out) == PyTorch weight.T
        bound = 1.0 / jnp.sqrt(fan_in)
        w = jax.random.uniform(kw, (fan_in, fan_out), jnp.float32, -bound, bound)
        b = jax.random.uniform(kb, (1, fan_out), jnp.float32, -bound, bound)
        return w, b

    params = {}
    params["embeds"] = jax.random.normal(ks[0], (vocab_size, embed_dim),
                                         jnp.float32)
    params["w1"], params["b1"] = lin(ks[1], ks[2], d_in, hidden_dim)
    params["w2"], params["b2"] = lin(ks[3], ks[4], hidden_dim, h2)
    params["w3"], params["b3"] = lin(ks[5], ks[6], h2, h3)
    params["wo"], params["bo"] = lin(ks[7], ks[8], h3, vocab_size)
    return params


def reference_forward(tokens, params, compute_dtype):
    """Plain-JAX reference with the same dtype policy as the kernel."""
    x = jnp.take(params["embeds"], tokens, axis=0).reshape(tokens.shape[0], -1)

    def lin(h, w, b):
        return jnp.dot(h.astype(compute_dtype), w.astype(compute_dtype),
                       preferred_element_type=jnp.float32) + b

    h = jnp.tanh(lin(x, params["w1"], params["b1"]))
    h = jnp.tanh(lin(h, params["w2"], params["b2"]))
    h = jnp.tanh(lin(h, params["w3"], params["b3"]))
    return lin(h, params["wo"], params["bo"])


if __name__ == "__main__":
    # Small shapes consistent with the module's forward.
    VOCAB, EMBED, CONTEXT, HIDDEN = 50, 16, 8, 32
    BATCH = 2

    key = jax.random.PRNGKey(0)
    k_tok, k_par = jax.random.split(key)
    params = init_params(k_par, VOCAB, EMBED, CONTEXT, HIDDEN)
    tokens = jax.random.randint(k_tok, (BATCH, CONTEXT), 0, VOCAB,
                                dtype=jnp.int32)

    # One-time prep: pad to 128-aligned layout + cast to bf16 (outside hot path).
    prepped = prepare_params(params)

    fwd = jax.jit(neural_lm2_forward, static_argnames=("vocab_size",))
    logits = fwd(tokens, prepped, vocab_size=VOCAB)
    jax.block_until_ready(logits)
    assert logits.shape == (BATCH, VOCAB)

    # Check against a reference with the same bf16-matmul/f32-accumulate policy
    # (kernel emits bf16 logits -> bf16-level tolerance), plus a loose sanity
    # check against pure-f32 math.
    logits_f32 = logits.astype(jnp.float32)
    ref_bf16 = reference_forward(tokens, params, jnp.bfloat16)
    ref_f32 = reference_forward(tokens, params, jnp.float32)
    assert jnp.allclose(logits_f32, ref_bf16, atol=2e-2, rtol=2e-2)
    assert jnp.allclose(logits_f32, ref_f32, atol=1.5e-1, rtol=1.5e-1)

    print("KERNEL_OK")
</pallas_src>

<mosaic_0001>
module attributes {stable_mosaic.version = 11 : i64} {
  func.func @neural_lm2_out_kernel(%arg0: i32, %arg1: i32, %arg2: memref<16x128xbf16, #tpu.memory_space<vmem>>, %arg3: memref<128x128xbf16, #tpu.memory_space<vmem>>, %arg4: memref<1x128xf32, #tpu.memory_space<vmem>>, %arg5: memref<16x128xbf16, #tpu.memory_space<vmem>>) attributes {dimension_semantics = [#tpu.dimension_semantics<parallel>, #tpu.dimension_semantics<parallel>], iteration_bounds = array<i64: 1, 1>, scalar_prefetch = 0 : i64, scratch_operands = 0 : i64, tpu.core_type = #tpu.core_type<tc>, window_params = [{transform_indices = @transform_0, window_bounds = array<i64: 16, 128>}, {transform_indices = @transform_1, window_bounds = array<i64: 128, 128>}, {transform_indices = @transform_2, window_bounds = array<i64: 1, 128>}, {transform_indices = @transform_3, window_bounds = array<i64: 16, 128>}]} {
    %c0 = arith.constant 0 : index
    %c0_0 = arith.constant 0 : index
    %0 = vector.load %arg2[%c0, %c0_0] : memref<16x128xbf16, #tpu.memory_space<vmem>>, vector<16x128xbf16>
    %c0_1 = arith.constant 0 : index
    %c0_2 = arith.constant 0 : index
    %1 = vector.load %arg3[%c0_1, %c0_2] : memref<128x128xbf16, #tpu.memory_space<vmem>>, vector<128x128xbf16>
    %cst = arith.constant dense<0.000000e+00> : vector<16x128xf32>
    %2 = tpu.matmul %0, %1, %cst {dimension_numbers = #tpu.dot_dimension_numbers<[1], [0], [0], [1], [0, 0, 1, 1], [], []>} : vector<16x128xbf16>, vector<128x128xbf16>, vector<16x128xf32> -> vector<16x128xf32>
    %c0_3 = arith.constant 0 : index
    %c0_4 = arith.constant 0 : index
    %3 = vector.load %arg4[%c0_3, %c0_4] : memref<1x128xf32, #tpu.memory_space<vmem>>, vector<1x128xf32>
    %4 = vector.broadcast %3 : vector<1x128xf32> to vector<16x128xf32>
    %5 = arith.addf %2, %4 : vector<16x128xf32>
    %6 = arith.truncf %5 : vector<16x128xf32> to vector<16x128xbf16>
    %c0_5 = arith.constant 0 : index
    %c0_6 = arith.constant 0 : index
    %7 = vector.load %arg5[%c0_5, %c0_6] : memref<16x128xbf16, #tpu.memory_space<vmem>>, vector<16x128xbf16>
    tpu.vector_store %arg5[%c0_5, %c0_6], %6 {strides = array<i32>} : memref<16x128xbf16, #tpu.memory_space<vmem>>, vector<16x128xbf16>,
    return
  }
  func.func @transform_0(%arg0: i32, %arg1: i32) -> (i32, i32) {
    %c0_i32 = arith.constant 0 : i32
    %c0_i32_0 = arith.constant 0 : i32
    return %arg1, %c0_i32 : i32, i32
  }
  func.func @transform_1(%arg0: i32, %arg1: i32) -> (i32, i32) {
    %c0_i32 = arith.constant 0 : i32
    %c0_i32_0 = arith.constant 0 : i32
    return %c0_i32, %arg0 : i32, i32
  }
  func.func @transform_2(%arg0: i32, %arg1: i32) -> (i32, i32) {
    %c0_i32 = arith.constant 0 : i32
    %c0_i32_0 = arith.constant 0 : i32
    return %c0_i32, %arg0 : i32, i32
  }
  func.func @transform_3(%arg0: i32, %arg1: i32) -> (i32, i32) {
    %c0_i32 = arith.constant 0 : i32
    return %arg1, %arg0 : i32, i32
  }
}

module attributes {stable_mosaic.version = 11 : i64} {
  func.func @neural_lm2_mlp_kernel(%arg0: i32, %arg1: memref<16x128xbf16, #tpu.memory_space<vmem>>, %arg2: memref<128x128xbf16, #tpu.memory_space<vmem>>, %arg3: memref<1x128xf32, #tpu.memory_space<vmem>>, %arg4: memref<128x128xbf16, #tpu.memory_space<vmem>>, %arg5: memref<1x128xf32, #tpu.memory_space<vmem>>, %arg6: memref<128x128xbf16, #tpu.memory_space<vmem>>, %arg7: memref<1x128xf32, #tpu.memory_space<vmem>>, %arg8: memref<16x128xbf16, #tpu.memory_space<vmem>>) attributes {dimension_semantics = [#tpu.dimension_semantics<parallel>], iteration_bounds = array<i64: 1>, scalar_prefetch = 0 : i64, scratch_operands = 0 : i64, tpu.core_type = #tpu.core_type<tc>, window_params = [{transform_indices = @transform_0, window_bounds = array<i64: 16, 128>}, {pipeline_mode = #tpu.pipeline_mode<synchronous>, transform_indices = @transform_1, window_bounds = array<i64: 128, 128>}, {pipeline_mode = #tpu.pipeline_mode<synchronous>, transform_indices = @transform_2, window_bounds = array<i64: 1, 128>}, {pipeline_mode = #tpu.pipeline_mode<synchronous>, transform_indices = @transform_3, window_bounds = array<i64: 128, 128>}, {pipeline_mode = #tpu.pipeline_mode<synchronous>, transform_indices = @transform_4, window_bounds = array<i64: 1, 128>}, {pipeline_mode = #tpu.pipeline_mode<synchronous>, transform_indices = @transform_5, window_bounds = array<i64: 128, 128>}, {pipeline_mode = #tpu.pipeline_mode<synchronous>, transform_indices = @transform_6, window_bounds = array<i64: 1, 128>}, {transform_indices = @transform_7, window_bounds = array<i64: 16, 128>}]} {
    %c0 = arith.constant 0 : index
    %c0_0 = arith.constant 0 : index
    %0 = vector.load %arg1[%c0, %c0_0] : memref<16x128xbf16, #tpu.memory_space<vmem>>, vector<16x128xbf16>
    %c0_1 = arith.constant 0 : index
    %c0_2 = arith.constant 0 : index
    %1 = vector.load %arg2[%c0_1, %c0_2] : memref<128x128xbf16, #tpu.memory_space<vmem>>, vector<128x128xbf16>
    %cst = arith.constant dense<0.000000e+00> : vector<16x128xf32>
    %2 = tpu.matmul %0, %1, %cst {dimension_numbers = #tpu.dot_dimension_numbers<[1], [0], [0], [1], [0, 0, 1, 1], [], []>} : vector<16x128xbf16>, vector<128x128xbf16>, vector<16x128xf32> -> vector<16x128xf32>
    %c0_3 = arith.constant 0 : index
    %c0_4 = arith.constant 0 : index
    %3 = vector.load %arg3[%c0_3, %c0_4] : memref<1x128xf32, #tpu.memory_space<vmem>>, vector<1x128xf32>
    %4 = vector.broadcast %3 : vector<1x128xf32> to vector<16x128xf32>
    %5 = arith.addf %2, %4 : vector<16x128xf32>
    %6 = math.tanh %5 : vector<16x128xf32>
    %7 = arith.truncf %6 : vector<16x128xf32> to vector<16x128xbf16>
    %c0_5 = arith.constant 0 : index
    %c0_6 = arith.constant 0 : index
    %8 = vector.load %arg4[%c0_5, %c0_6] : memref<128x128xbf16, #tpu.memory_space<vmem>>, vector<128x128xbf16>
    %cst_7 = arith.constant dense<0.000000e+00> : vector<16x128xf32>
    %9 = tpu.matmul %7, %8, %cst_7 {dimension_numbers = #tpu.dot_dimension_numbers<[1], [0], [0], [1], [0, 0, 1, 1], [], []>} : vector<16x128xbf16>, vector<128x128xbf16>, vector<16x128xf32> -> vector<16x128xf32>
    %c0_8 = arith.constant 0 : index
    %c0_9 = arith.constant 0 : index
    %10 = vector.load %arg5[%c0_8, %c0_9] : memref<1x128xf32, #tpu.memory_space<vmem>>, vector<1x128xf32>
    %11 = vector.broadcast %10 : vector<1x128xf32> to vector<16x128xf32>
    %12 = arith.addf %9, %11 : vector<16x128xf32>
    %13 = math.tanh %12 : vector<16x128xf32>
    %14 = arith.truncf %13 : vector<16x128xf32> to vector<16x128xbf16>
    %c0_10 = arith.constant 0 : index
    %c0_11 = arith.constant 0 : index
    %15 = vector.load %arg6[%c0_10, %c0_11] : memref<128x128xbf16, #tpu.memory_space<vmem>>, vector<128x128xbf16>
    %cst_12 = arith.constant dense<0.000000e+00> : vector<16x128xf32>
    %16 = tpu.matmul %14, %15, %cst_12 {dimension_numbers = #tpu.dot_dimension_numbers<[1], [0], [0], [1], [0, 0, 1, 1], [], []>} : vector<16x128xbf16>, vector<128x128xbf16>, vector<16x128xf32> -> vector<16x128xf32>
    %c0_13 = arith.constant 0 : index
    %c0_14 = arith.constant 0 : index
    %17 = vector.load %arg7[%c0_13, %c0_14] : memref<1x128xf32, #tpu.memory_space<vmem>>, vector<1x128xf32>
    %18 = vector.broadcast %17 : vector<1x128xf32> to vector<16x128xf32>
    %19 = arith.addf %16, %18 : vector<16x128xf32>
    %20 = math.tanh %19 : vector<16x128xf32>
    %21 = arith.truncf %20 : vector<16x128xf32> to vector<16x128xbf16>
    %c0_15 = arith.constant 0 : index
    %c0_16 = arith.constant 0 : index
    %22 = vector.load %arg8[%c0_15, %c0_16] : memref<16x128xbf16, #tpu.memory_space<vmem>>, vector<16x128xbf16>
    tpu.vector_store %arg8[%c0_15, %c0_16], %21 {strides = array<i32>} : memref<16x128xbf16, #tpu.memory_space<vmem>>, vector<16x128xbf16>,
    return
  }
  func.func @transform_0(%arg0: i32) -> (i32, i32) {
    %c0_i32 = arith.constant 0 : i32
    %c0_i32_0 = arith.constant 0 : i32
    return %arg0, %c0_i32 : i32, i32
  }
  func.func @transform_1(%arg0: i32) -> (i32, i32) {
    %c0_i32 = arith.constant 0 : i32
    %c0_i32_0 = arith.constant 0 : i32
    %c0_i32_1 = arith.constant 0 : i32
    return %c0_i32, %c0_i32_0 : i32, i32
  }
  func.func @transform_2(%arg0: i32) -> (i32, i32) {
    %c0_i32 = arith.constant 0 : i32
    %c0_i32_0 = arith.constant 0 : i32
    %c0_i32_1 = arith.constant 0 : i32
    return %c0_i32, %c0_i32_0 : i32, i32
  }
  func.func @transform_3(%arg0: i32) -> (i32, i32) {
    %c0_i32 = arith.constant 0 : i32
    %c0_i32_0 = arith.constant 0 : i32
    %c0_i32_1 = arith.constant 0 : i32
    return %c0_i32, %c0_i32_0 : i32, i32
  }
  func.func @transform_4(%arg0: i32) -> (i32, i32) {
    %c0_i32 = arith.constant 0 : i32
    %c0_i32_0 = arith.constant 0 : i32
    %c0_i32_1 = arith.constant 0 : i32
    return %c0_i32, %c0_i32_0 : i32, i32
  }
  func.func @transform_5(%arg0: i32) -> (i32, i32) {
    %c0_i32 = arith.constant 0 : i32
    %c0_i32_0 = arith.constant 0 : i32
    %c0_i32_1 = arith.constant 0 : i32
    return %c0_i32, %c0_i32_0 : i32, i32
  }
  func.func @transform_6(%arg0: i32) -> (i32, i32) {
    %c0_i32 = arith.constant 0 : i32
    %c0_i32_0 = arith.constant 0 : i32
    %c0_i32_1 = arith.constant 0 : i32
    return %c0_i32, %c0_i32_0 : i32, i32
  }
  func.func @transform_7(%arg0: i32) -> (i32, i32) {
    %c0_i32 = arith.constant 0 : i32
    %c0_i32_0 = arith.constant 0 : i32
    return %arg0, %c0_i32 : i32, i32
  }
}

</mosaic_0001>

<bundles_post_ra>
// kernel: neural_lm2_forward.3
= control target key start
LH: loop header
LB: loop body
LE: loop exit
PB: predicated region body
PF: predicated region fallthrough
CT: control target
= control target key end

     0   :  { %8 = vsyncpa [#allocation3], 0  ;;  %s209_s15 = smov [#allocation2]   ;;  %s210_s17 = smov 64   ;;  %s244_s0 = inlined_call_operand.vmem [shape: bf16[16,128], index: 0, kind: input, shape index: {}]   ;;  %s245_s1 = inlined_call_operand.hbm [shape: bf16[128,128], index: 1, kind: input, shape index: {}]   ;;  %s246_s2 = inlined_call_operand.vmem [shape: f32[1,128], index: 2, kind: input, shape index: {}]   ;;  %s247_s3 = inlined_call_operand.vmem [shape: bf16[16,128], index: 3, kind: output, shape index: {}]  }
   0x1   :  { %s15_s14 = sshll.u32 %s245_s1, 4  ;;  %s17_s16 = sshll.u32 %s209_s15, 4  ;;  %s16_s14 = int_to_ptr.hbm [resolvable:$true] %s15_s14  ;;  %s18_s16 = int_to_ptr.vmem [resolvable:$true] %s17_s16 }
   0x2   :  { %s211_s18 = smov 4  }
   0x3   :  { %23 = dma.hbm_to_vmem [thread:$0]  %s16_s14, 1024, %s18_s16, [#allocation3], %s210_s17, %s210_s17, %s211_s18  }
   0x4   :  { %207 = dma.done.wait [#allocation3], 1024  }
   0x5   :  { %208 = vsyncadd [#allocation3], 4294966272  ;;  %v173_v0 = vld [vmem:[#allocation2 + $0x38] sm:$0xff]  ;;  %v172_v1 = vld [vmem:[#allocation2 + $0x30] sm:$0xff] }
   0x6   :  { %106 = vmatpush.bf16.msra.mxu0 %v173_v0  ;;  %v171_v2 = vld [vmem:[#allocation2 + $0x28] sm:$0xff]  ;;  %v170_v3 = vld [vmem:[#allocation2 + $0x20] sm:$0xff]  ;;  %v169_v4 = vld [vmem:[#allocation2 + $0x18] sm:$0xff] }
   0x7   :  { %v168_v5 = vld [vmem:[#allocation2 + $0x10] sm:$0xff]  ;;  %v167_v6 = vld [vmem:[#allocation2 + $0x8] sm:$0xff]  ;;  %v166_v7 = vld [vmem:[#allocation2] sm:$0xff] }
   0x8   :  { %v165_v8 = vld [vmem:[%s244_s0] sm:$0xff] }
   0x9   :  { %v182_v10 = vld [vmem:[%s246_s2] ss:$0 sm:$0xff] }
   0xa   :  { %107 = vmatpush.bf16.msra.mxu0 %v172_v1 }
   0xe   :  { %108 = vmatpush.bf16.msra.mxu0 %v171_v2 }
  0x12   :  { %109 = vmatpush.bf16.msra.mxu0 %v170_v3 }
  0x16   :  { %110 = vmatpush.bf16.msra.mxu0 %v169_v4 }
  0x1a   :  { %111 = vmatpush.bf16.msra.mxu0 %v168_v5 }
  0x1e   :  { %112 = vmatpush.bf16.msra.mxu0 %v167_v6 }
  0x22   :  { %113 = vmatpush.bf16.msra.mxu0 %v166_v7 }
  0x25   :  { %114 = vmatmul.bf16.vlgmr.msra.gmra.mxu0 %v165_v8 }
  0xa2   :  { %v115_v9 = vpop.f32.mrf.mxu0 }
  0xa3   :  { %v116_v12 = vadd.f32 %v182_v10, %v115_v9 }
  0xaa   :  { %v117_v11 = vpop.f32.mrf.mxu0 }
  0xab   :  { %v118_v13 = vadd.f32 %v182_v10, %v117_v11 }
  0xad   :  { %v177_v14 = vpack.c.bf16 %v118_v13, %v116_v12 }
  0xaf   :  { %178 = vst [vmem:[%s247_s3] sm:$0xff] %v177_v14  }
  0xb0   :  { %128 = vsyncpa [#allocation3], 1 }

// kernel: neural_lm2_forward.2
= control target key start
LH: loop header
LB: loop body
LE: loop exit
PB: predicated region body
PF: predicated region fallthrough
CT: control target
= control target key end

     0   :  { %12 = vsyncpa [#allocation3], 0  ;;  %s487_s27 = smov [#allocation2]   ;;  %s488_s29 = smov 64   ;;  %s596_s0 = inlined_call_operand.vmem [shape: bf16[16,128], index: 0, kind: input, shape index: {}]   ;;  %s597_s1 = inlined_call_operand.vmem [shape: bf16[128,128], index: 1, kind: input, shape index: {}]   ;;  %s598_s2 = inlined_call_operand.vmem [shape: f32[1,128], index: 2, kind: input, shape index: {}]   ;;  %s599_s3 = inlined_call_operand.vmem [shape: bf16[128,128], index: 3, kind: input, shape index: {}]   ;;  %s600_s4 = inlined_call_operand.vmem [shape: f32[1,128], index: 4, kind: input, shape index: {}]   ;;  %s601_s5 = inlined_call_operand.hbm [shape: bf16[128,128], index: 5, kind: input, shape index: {}]   ;;  %s602_s6 = inlined_call_operand.vmem [shape: f32[1,128], index: 6, kind: input, shape index: {}]   ;;  %s603_s7 = inlined_call_operand.vmem [shape: bf16[16,128], index: 7, kind: output, shape index: {}]  }
   0x1   :  { %s27_s26 = sshll.u32 %s601_s5, 4  ;;  %s29_s28 = sshll.u32 %s487_s27, 4  ;;  %s28_s26 = int_to_ptr.hbm [resolvable:$true] %s27_s26  ;;  %s30_s28 = int_to_ptr.vmem [resolvable:$true] %s29_s28 }
   0x2   :  { %s489_s30 = smov 4  }
   0x3   :  { %35 = dma.hbm_to_vmem [thread:$0]  %s28_s26, 1024, %s30_s28, [#allocation3], %s488_s29, %s488_s29, %s489_s30  }
   0x4   :  { %485 = dma.done.wait [#allocation3], 1024  }
   0x5   :  { %486 = vsyncadd [#allocation3], 4294966272  ;;  %v421_v0 = vld [vmem:[%s597_s1 + $0x38] sm:$0xff]  ;;  %v420_v1 = vld [vmem:[%s597_s1 + $0x30] sm:$0xff] }
   0x6   :  { %118 = vmatpush.bf16.msra.mxu0 %v421_v0  ;;  %v429_v2 = vld [vmem:[%s599_s3 + $0x38] sm:$0xff]  ;;  %v428_v3 = vld [vmem:[%s599_s3 + $0x30] sm:$0xff]  ;;  %v419_v4 = vld [vmem:[%s597_s1 + $0x28] sm:$0xff] }
   0x7   :  { %203 = vmatpush.bf16.msra.mxu1 %v429_v2  ;;  %v427_v5 = vld [vmem:[%s599_s3 + $0x28] sm:$0xff]  ;;  %v418_v6 = vld [vmem:[%s597_s1 + $0x20] sm:$0xff]  ;;  %v417_v7 = vld [vmem:[%s597_s1 + $0x18] sm:$0xff] }
   0x8   :  { %v416_v8 = vld [vmem:[%s597_s1 + $0x10] sm:$0xff]  ;;  %v415_v9 = vld [vmem:[%s597_s1 + $0x8] sm:$0xff]  ;;  %v414_v10 = vld [vmem:[%s597_s1] sm:$0xff] }
   0x9   :  { %v413_v11 = vld [vmem:[%s596_s0] sm:$0xff]  ;;  %v425_v13 = vld [vmem:[%s599_s3 + $0x18] sm:$0xff]  ;;  %v424_v14 = vld [vmem:[%s599_s3 + $0x10] sm:$0xff] }
   0xa   :  { %119 = vmatpush.bf16.msra.mxu0 %v420_v1  ;;  %v426_v12 = vld [vmem:[%s599_s3 + $0x20] sm:$0xff]  ;;  %v423_v15 = vld [vmem:[%s599_s3 + $0x8] sm:$0xff]  ;;  %v437_v17 = vld [vmem:[#allocation2 + $0x38] sm:$0xff] }
   0xb   :  { %204 = vmatpush.bf16.msra.mxu1 %v428_v3  ;;  %v422_v16 = vld [vmem:[%s599_s3] sm:$0xff]  ;;  %288 = vmatpush.bf16.msra.mxu2 %v437_v17  ;;  %v436_v18 = vld [vmem:[#allocation2 + $0x30] sm:$0xff]  ;;  %v435_v19 = vld [vmem:[#allocation2 + $0x28] sm:$0xff] }
   0xc   :  { %v446_v21 = vld [vmem:[%s598_s2] ss:$0 sm:$0xff]  ;;  %v433_v29 = vld [vmem:[#allocation2 + $0x18] sm:$0xff]  ;;  %v432_v30 = vld [vmem:[#allocation2 + $0x10] sm:$0xff] }
   0xd   :  { %v434_v28 = vld [vmem:[#allocation2 + $0x20] sm:$0xff]  ;;  %v431_v31 = vld [vmem:[#allocation2 + $0x8] sm:$0xff] }
   0xe   :  { %120 = vmatpush.bf16.msra.mxu0 %v419_v4  ;;  %v430_v32 = vld [vmem:[#allocation2] sm:$0xff] }
   0xf   :  { %205 = vmatpush.bf16.msra.mxu1 %v427_v5  ;;  %289 = vmatpush.bf16.msra.mxu2 %v436_v18  ;;  %v447_v34 = vld [vmem:[%s600_s4] ss:$0 sm:$0xff] }
  0x10   :  { %v448_v42 = vld [vmem:[%s602_s6] ss:$0 sm:$0xff] }
  0x12   :  { %121 = vmatpush.bf16.msra.mxu0 %v418_v6 }
  0x13   :  { %206 = vmatpush.bf16.msra.mxu1 %v426_v12  ;;  %290 = vmatpush.bf16.msra.mxu2 %v435_v19 }
  0x16   :  { %122 = vmatpush.bf16.msra.mxu0 %v417_v7 }
  0x17   :  { %207 = vmatpush.bf16.msra.mxu1 %v425_v13  ;;  %291 = vmatpush.bf16.msra.mxu2 %v434_v28 }
  0x1a   :  { %123 = vmatpush.bf16.msra.mxu0 %v416_v8 }
  0x1b   :  { %208 = vmatpush.bf16.msra.mxu1 %v424_v14  ;;  %292 = vmatpush.bf16.msra.mxu2 %v433_v29 }
  0x1e   :  { %124 = vmatpush.bf16.msra.mxu0 %v415_v9 }
  0x1f   :  { %209 = vmatpush.bf16.msra.mxu1 %v423_v15  ;;  %293 = vmatpush.bf16.msra.mxu2 %v432_v30 }
  0x22   :  { %125 = vmatpush.bf16.msra.mxu0 %v414_v10 }
  0x23   :  { %210 = vmatpush.bf16.msra.mxu1 %v422_v16  ;;  %294 = vmatpush.bf16.msra.mxu2 %v431_v31 }
  0x25   :  { %126 = vmatmul.bf16.vlgmr.msra.gmra.mxu0 %v413_v11 }
  0x27   :  { %295 = vmatpush.bf16.msra.mxu2 %v430_v32 }
  0xa2   :  { %v127_v20 = vpop.f32.mrf.mxu0 }
  0xa3   :  { %v128_v22 = vadd.f32 %v446_v21, %v127_v20 }
  0xa5   :  { %449 = vtanh.f32 %v128_v22 }
  0xaa   :  { %v129_v23 = vpop.f32.mrf.mxu0 }
  0xab   :  { %v130_v24 = vadd.f32 %v446_v21, %v129_v23  ;;  %v450_v25 = vpop.eup %449 }
  0xad   :  { %451 = vtanh.f32 %v130_v24 }
  0xb3   :  { %v452_v26 = vpop.eup %451 }
  0xb4   :  { %v134_v27 = vpack.c.bf16 %v452_v26, %v450_v25 }
  0xb6   :  { %211 = vmatmul.bf16.vlgmr.msra.gmra.mxu1 %v134_v27 }
 0x133   :  { %v212_v33 = vpop.f32.mrf.mxu1 }
 0x134   :  { %v213_v35 = vadd.f32 %v447_v34, %v212_v33 }
 0x136   :  { %453 = vtanh.f32 %v213_v35 }
 0x13b   :  { %v214_v36 = vpop.f32.mrf.mxu1 }
 0x13c   :  { %v215_v37 = vadd.f32 %v447_v34, %v214_v36  ;;  %v454_v38 = vpop.eup %453 }
 0x13e   :  { %455 = vtanh.f32 %v215_v37 }
 0x144   :  { %v456_v39 = vpop.eup %455 }
 0x145   :  { %v219_v40 = vpack.c.bf16 %v456_v39, %v454_v38 }
 0x147   :  { %296 = vmatmul.bf16.vlgmr.msra.gmra.mxu2 %v219_v40 }
 0x1ca   :  { %v297_v41 = vpop.f32.mrf.mxu2 }
 0x1cb   :  { %v298_v43 = vadd.f32 %v448_v42, %v297_v41 }
 0x1cd   :  { %457 = vtanh.f32 %v298_v43 }
 0x1d2   :  { %v299_v44 = vpop.f32.mrf.mxu2 }
 0x1d3   :  { %v300_v45 = vadd.f32 %v448_v42, %v299_v44  ;;  %v458_v46 = vpop.eup %457 }
 0x1d5   :  { %459 = vtanh.f32 %v300_v45 }
 0x1db   :  { %v460_v47 = vpop.eup %459 }
 0x1dc   :  { %v441_v48 = vpack.c.bf16 %v460_v47, %v458_v46 }
 0x1de   :  { %442 = vst [vmem:[%s603_s7] sm:$0xff] %v441_v48  }
 0x1df   :  { %312 = vsyncpa [#allocation3], 1 }

</bundles_post_ra>
